<compile_context>
chip_gen: v7x
topology: tpu7x:2x2x1
jax: 0.10.0
libtpu: 0.0.40
codegen_flags: <defaults>
</compile_context>

<pallas_src>
import math

import jax
import jax.numpy as jnp
from jax.experimental import pallas as pl
from jax.experimental.pallas import tpu as pltpu


def _round_up(x: int, n: int) -> int:
    return ((x + n - 1) // n) * n


def _generator_kernel(x_ref, w_ref, b_ref, o_ref):
    # x_ref: (TM, K)   w_ref: (K, N)   b_ref: (1, N)   o_ref: (TM, N)
    x = x_ref[...]
    w = w_ref[...]
    if w.dtype != x.dtype:            # bf16-weight path: feed the MXU bf16
        x = x.astype(w.dtype)
    y = jnp.dot(x, w, preferred_element_type=jnp.float32)   # MXU, f32 acc
    y = y + b_ref[...]                                        # VPU epilogue
    o_ref[...] = jnp.maximum(y, 0.0).astype(o_ref.dtype)      # relu + store


def prepare_generator_params(weight, bias, *, mxu_dtype=None):
    """One-time parameter preparation (do NOT call per forward).

    weight: (d_wind, d_model)  PyTorch nn.Linear layout.
    bias:   (d_wind,)
    Returns (w_t, b2d): w_t is (d_model, d_wind) [optionally cast to
    `mxu_dtype`, e.g. jnp.bfloat16 for v6e/v7x], b2d is (1, d_wind) float32.
    """
    w_t = jnp.asarray(weight).T                    # (K, N), transposed once
    if mxu_dtype is not None:
        w_t = w_t.astype(mxu_dtype)
    b2d = jnp.asarray(bias, jnp.float32).reshape(1, -1)
    return w_t, b2d


def _choose_tm(m, k, n, *, vmem_target_bytes=40 << 20, itemsize=4):
    """Largest row tile whose pipeline working set fits the VMEM target."""
    kp = _round_up(k, 128)
    np_ = _round_up(n, 128)
    m_rows = _round_up(max(m, 1), 8)
    # Resident weight (count 2 buffers conservatively) + bias row.
    fixed = 2 * _round_up(k, 8) * np_ * itemsize + 2 * 8 * np_ * itemsize
    per_row = 2 * (kp + np_) * itemsize            # double-buffered x + out
    cap = (vmem_target_bytes - fixed) // max(per_row, 1)
    cap = max(8, min(int(cap), 1024))
    cap = (cap // 8) * 8
    if m_rows <= cap:
        return m_rows                              # one tile covers all rows
    # Among a few candidates <= cap: minimize last-tile waste, then grid steps.
    best_tm, best_key = cap, None
    for cand in sorted({cap, 1024, 768, 512, 384, 256, 128}, reverse=True):
        cand = (min(cand, cap) // 8) * 8
        if cand < 8:
            continue
        g = -(-m // cand)
        key = (g * cand - m, g)                    # (waste, grid steps)
        if best_key is None or key < best_key:
            best_key, best_tm = key, cand
    return best_tm


def generator_forward(x, w_t, b2d, *, tm=None):
    """relu(x @ W.T + b) with pre-prepared params.

    x:   (..., d_model) float32
    w_t: (d_model, d_wind)  from prepare_generator_params
    b2d: (1, d_wind) float32
    """
    k, n = w_t.shape
    assert x.shape[-1] == k
    lead = x.shape[:-1]
    m = int(math.prod(lead)) if lead else 1
    x2d = x.reshape(m, k)                          # metadata-only reshape

    tm_eff = tm if tm is not None else _choose_tm(m, k, n)
    tm_eff = max(8, (min(tm_eff, _round_up(m, 8)) // 8) * 8)
    grid_m = pl.cdiv(m, tm_eff)

    # Explicit VMEM budget (layout-padded dims) -> explicit scoped limit.
    kp, np_ = _round_up(k, 128), _round_up(n, 128)
    need = (2 * tm_eff * (kp + np_) * 4
            + 2 * _round_up(k, 8) * np_ * w_t.dtype.itemsize
            + 2 * 8 * np_ * 4)
    vmem_limit = int(min(max(need + (8 << 20), 32 << 20), 64 << 20))

    cost = pl.CostEstimate(
        flops=2 * m * k * n,
        transcendentals=0,
        bytes_accessed=(x2d.size * x2d.dtype.itemsize
                        + w_t.size * w_t.dtype.itemsize
                        + b2d.size * 4
                        + m * n * 4),
    )

    # TODO(synk): add an N grid axis (and a K axis + f32 accumulator scratch)
    # once d_model*d_wind no longer fits resident in VMEM (threshold halves on v7x).
    out2d = pl.pallas_call(
        _generator_kernel,
        out_shape=jax.ShapeDtypeStruct((m, n), x.dtype),
        grid_spec=pltpu.PrefetchScalarGridSpec(
            num_scalar_prefetch=0,
            grid=(grid_m,),
            in_specs=[
                pl.BlockSpec((tm_eff, k), lambda i: (i, 0)),   # x row tile, pipelined
                pl.BlockSpec((k, n), lambda i: (0, 0)),        # weight, resident
                pl.BlockSpec((1, n), lambda i: (0, 0)),        # bias, resident
            ],
            out_specs=pl.BlockSpec((tm_eff, n), lambda i: (i, 0)),
        ),
        compiler_params=pltpu.CompilerParams(
            dimension_semantics=("parallel",),     # shard row tiles across TCs (v7x)
            vmem_limit_bytes=vmem_limit,
        ),
        cost_estimate=cost,
    )(x2d, w_t, b2d)

    return out2d.reshape(*lead, n)


if __name__ == "__main__":
    # Small shapes consistent with the module: batch=2, seq=8, d_model=32, d_wind=16
    batch, seq, d_model, d_wind = 2, 8, 32, 16

    key = jax.random.PRNGKey(0)
    kx, kw, kb = jax.random.split(key, 3)

    x = jax.random.normal(kx, (batch, seq, d_model), dtype=jnp.float32)
    # Deterministic "nn.Linear"-style parameter init (uniform in +-1/sqrt(d_model))
    bound = 1.0 / (d_model ** 0.5)
    weight = jax.random.uniform(kw, (d_wind, d_model), dtype=jnp.float32,
                                minval=-bound, maxval=bound)
    bias = jax.random.uniform(kb, (d_wind,), dtype=jnp.float32,
                              minval=-bound, maxval=bound)

    # One-time parameter prep (use mxu_dtype=jnp.bfloat16 on v6e/v7x if the
    # downstream tolerance allows it; f32 here so the check stays exact).
    w_t, b2d = prepare_generator_params(weight, bias, mxu_dtype=None)

    out = generator_forward(x, w_t, b2d)
    out = jax.block_until_ready(out)

    # Reference check against plain JAX (same math as F.relu(nn.Linear(x)))
    ref = jnp.maximum(x @ weight.T + bias, 0.0)
    assert out.shape == (batch, seq, d_wind)
    assert jnp.allclose(out, ref, atol=1e-5, rtol=1e-5)

    print("KERNEL_OK")
</pallas_src>

<mosaic_0001>
module attributes {stable_mosaic.version = 11 : i64} {
  func.func @_generator_kernel(%arg0: i32, %arg1: memref<16x32xf32, #tpu.memory_space<vmem>>, %arg2: memref<32x16xf32, #tpu.memory_space<vmem>>, %arg3: memref<1x16xf32, #tpu.memory_space<vmem>>, %arg4: memref<16x16xf32, #tpu.memory_space<vmem>>) attributes {dimension_semantics = [#tpu.dimension_semantics<parallel>], iteration_bounds = array<i64: 1>, scalar_prefetch = 0 : i64, scratch_operands = 0 : i64, tpu.core_type = #tpu.core_type<tc>, window_params = [{transform_indices = @transform_0, window_bounds = array<i64: 16, 32>}, {pipeline_mode = #tpu.pipeline_mode<synchronous>, transform_indices = @transform_1, window_bounds = array<i64: 32, 16>}, {pipeline_mode = #tpu.pipeline_mode<synchronous>, transform_indices = @transform_2, window_bounds = array<i64: 1, 16>}, {transform_indices = @transform_3, window_bounds = array<i64: 16, 16>}]} {
    %c0 = arith.constant 0 : index
    %c0_0 = arith.constant 0 : index
    %0 = vector.load %arg1[%c0, %c0_0] : memref<16x32xf32, #tpu.memory_space<vmem>>, vector<16x32xf32>
    %c0_1 = arith.constant 0 : index
    %c0_2 = arith.constant 0 : index
    %1 = vector.load %arg2[%c0_1, %c0_2] : memref<32x16xf32, #tpu.memory_space<vmem>>, vector<32x16xf32>
    %cst = arith.constant dense<0.000000e+00> : vector<16x16xf32>
    %2 = tpu.matmul %0, %1, %cst {dimension_numbers = #tpu.dot_dimension_numbers<[1], [0], [0], [1], [0, 0, 1, 1], [], []>} : vector<16x32xf32>, vector<32x16xf32>, vector<16x16xf32> -> vector<16x16xf32>
    %c0_3 = arith.constant 0 : index
    %c0_4 = arith.constant 0 : index
    %3 = vector.load %arg3[%c0_3, %c0_4] : memref<1x16xf32, #tpu.memory_space<vmem>>, vector<1x16xf32>
    %4 = vector.broadcast %3 : vector<1x16xf32> to vector<16x16xf32>
    %5 = arith.addf %2, %4 : vector<16x16xf32>
    %cst_5 = arith.constant 0.000000e+00 : f32
    %6 = vector.broadcast %cst_5 : f32 to vector<16x16xf32>
    %7 = arith.maximumf %5, %6 : vector<16x16xf32>
    %c0_6 = arith.constant 0 : index
    %c0_7 = arith.constant 0 : index
    %8 = vector.load %arg4[%c0_6, %c0_7] : memref<16x16xf32, #tpu.memory_space<vmem>>, vector<16x16xf32>
    tpu.vector_store %arg4[%c0_6, %c0_7], %7 {strides = array<i32>} : memref<16x16xf32, #tpu.memory_space<vmem>>, vector<16x16xf32>,
    return
  }
  func.func @transform_0(%arg0: i32) -> (i32, i32) {
    %c0_i32 = arith.constant 0 : i32
    %c0_i32_0 = arith.constant 0 : i32
    return %arg0, %c0_i32 : i32, i32
  }
  func.func @transform_1(%arg0: i32) -> (i32, i32) {
    %c0_i32 = arith.constant 0 : i32
    %c0_i32_0 = arith.constant 0 : i32
    %c0_i32_1 = arith.constant 0 : i32
    return %c0_i32, %c0_i32_0 : i32, i32
  }
  func.func @transform_2(%arg0: i32) -> (i32, i32) {
    %c0_i32 = arith.constant 0 : i32
    %c0_i32_0 = arith.constant 0 : i32
    %c0_i32_1 = arith.constant 0 : i32
    return %c0_i32, %c0_i32_0 : i32, i32
  }
  func.func @transform_3(%arg0: i32) -> (i32, i32) {
    %c0_i32 = arith.constant 0 : i32
    %c0_i32_0 = arith.constant 0 : i32
    return %arg0, %c0_i32 : i32, i32
  }
}

</mosaic_0001>

<bundles_post_ra>
// kernel: tpu_custom_call.1
= control target key start
LH: loop header
LB: loop body
LE: loop exit
PB: predicated region body
PF: predicated region fallthrough
CT: control target
= control target key end

     0   :  { %vm28_vm0 = vcmask 261120   ;;  %s242_s0 = inlined_call_operand.vmem [shape: f32[16,32], index: 0, kind: input, shape index: {}]   ;;  %s243_s1 = inlined_call_operand.vmem [shape: f32[32,16], index: 1, kind: input, shape index: {}]   ;;  %s244_s2 = inlined_call_operand.vmem [shape: f32[1,16], index: 2, kind: input, shape index: {}]   ;;  %s245_s3 = inlined_call_operand.hbm [shape: f32[16,16], index: 3, kind: output, shape index: {}]  }
   0x1   :  { %v17_v0 = vld [vmem:[%s243_s1] sm:$0xff]  ;;  %v18_v1 = vld [vmem:[%s243_s1 + $0x8] sm:$0xff]  ;;  %v19_v2 = vld [vmem:[%s243_s1 + $0x10] sm:$0xff] }
   0x2   :  { %v151_v3 = vpack.c.bf16 %v18_v1, %v17_v0  ;;  %v20_v4 = vld [vmem:[%s243_s1 + $0x18] sm:$0xff]  ;;  %v15_v5 = vld [vmem:[%s242_s0] sm:$0xff] }
   0x3   :  { %v155_v6 = vpack.c.bf16 %v20_v4, %v19_v2  ;;  %148 = vmatprep.mubr.msk.f32.mxu0 %vm28_vm0, %v15_v5 }
   0x4   :  { %8 = vsyncpa [#allocation3], 0  ;;  %152 = vmatprep.subr.bf16.mxu0 %v151_v3  ;;  %v16_v7 = vld [vmem:[%s242_s0 + $0x8] sm:$0xff]  ;;  %v131_v8 = vld [vmem:[%s244_s2] ss:$0 sm:$0xff]  ;;  %s186_s1 = smov [#allocation2]  }
   0x5   :  { %154 = vmatpush3.bf16.msra.mxu0 %v151_v3  ;;  %s120_s26 = sshll.u32 %s186_s1, 4  ;;  %vm112_vm1 = vcmask 130048   ;;  %s121_s26 = int_to_ptr.vmem [resolvable:$true] %s120_s26 }
   0x6   :  { %156 = vmatprep.subr.bf16.mxu0 %v155_v6  ;;  %s162_s27 = scalar_lea.vmem %s121_s26, 256  ;;  %p167_p1 = scmp.lt.s32.totalorder %s121_s26, %s121_s26 }
   0x7   :  { %p163_p0 = scmp.ne.s32.totalorder %s121_s26, %s162_s27  ;;  %p168_p2 = scmp.lt.s32.totalorder %s162_s27, %s162_s27 }
   0x9   :  { %158 = vmatpush3.bf16.msra.mxu0 %v155_v6  ;;  %p169_p3 = por %p168_p2, %p167_p1 }
   0xb   :  { %p170_p4 = pnand %p169_p3, %p163_p0 }
   0xc   :  { %149 = vmatmul.mubr.msk.f32.vlgmr.msra.gmra.mrb[0].mxu0 %vm28_vm0, %v16_v7 }
  0xdf   :  { %v150_v9 = vpop.f32.mrb[0].mxu0 }
  0xe0   :  { %v107_v10 = vadd.f32 %v150_v9, %v131_v8  ;;  %v101_v11 = vpop.f32.mrb[1].mxu0 }
  0xe1   :  { %v102_v12 = vadd.f32 %v131_v8, %v101_v11 }
  0xe2   :  { %v111_v13 = vmax.f32 %v107_v10, 0.0 }
  0xe3   :  { %v110_v14 = vmax.f32 %v102_v12, 0.0 }
  0xe4   :  { %114 = vst.msk [vmem:[#allocation2 + $0x8] sm:$0xff] %vm112_vm1, %v111_v13 }
  0xe5   :  { %113 = vst.msk [vmem:[#allocation2] sm:$0xff] %vm112_vm1, %v110_v14 }
  0xe6   :  { %173 = shalt.err (!%p170_p4)
}
  0xe7   :  { %s174_s28 = scalar_lea.hbm %s245_s3, 256 }
  0xe8   :  { %p175_p5 = scmp.ne.s32.totalorder %s245_s3, %s174_s28  ;;  %p178_p6 = scmp.lt.u32.totalorder %s174_s28, %s245_s3 }
  0xea   :  { %p180_p7 = pnand %p178_p6, %p175_p5 }
  0xec   :  { %183 = shalt.err (!%p180_p7)
}
  0xed   :  { %s187_s6 = smov 128   ;;  %s188_s7 = smov 8  }
  0xee   :  { %126 = dma.vmem_to_hbm [thread:$0]  %s121_s26, 256, %s245_s3, [#allocation3], %s187_s6, %s187_s6, %s188_s7  }
  0xef   :  { %184 = dma.done.wait [#allocation3], 256  }
  0xf0   :  { %185 = vsyncadd [#allocation3], 4294967040 }
  0xf1   :  { %130 = vsyncpa [#allocation3], 1 }

</bundles_post_ra>
